<compile_context>
chip_gen: v7x
topology: tpu7x:2x2x1
jax: 0.10.0
libtpu: 0.0.40
codegen_flags: <defaults>
</compile_context>

<pallas_src>
import jax
import jax.numpy as jnp
from jax.experimental import pallas as pl
from jax.experimental.pallas import tpu as pltpu


def _round_up(x, m):
    return ((x + m - 1) // m) * m


# --------------------------------------------------------------------------
# Kernels
# --------------------------------------------------------------------------
def _gcn_prelu_kernel(alpha_ref, x_ref, w_ref, o_ref):
    # alpha_ref: (1,)  f32 in SMEM
    # x_ref:     (tm, K)   activations (f32 or bf16), cast to bf16 in-kernel
    # w_ref:     (K, tn)   bf16 weight block (resident; constant index_map)
    # o_ref:     (tm, tn)  output block (f32 or bf16)
    h = jnp.dot(x_ref[...].astype(jnp.bfloat16), w_ref[...],
                preferred_element_type=jnp.float32)
    a = alpha_ref[0]
    o_ref[...] = jnp.where(h > 0, h, a * h).astype(o_ref.dtype)


def _gcn_linear_kernel(x_ref, w_ref, o_ref):
    h = jnp.dot(x_ref[...].astype(jnp.bfloat16), w_ref[...],
                preferred_element_type=jnp.float32)
    o_ref[...] = h.astype(o_ref.dtype)


# --------------------------------------------------------------------------
# Tiling heuristics (generation-aware)
# --------------------------------------------------------------------------
def _vmem_limit_bytes():
    try:
        cap = pltpu.get_tpu_info().vmem_capacity_bytes
    except Exception:
        cap = 64 * 1024 * 1024  # conservative (v7x-sized) fallback
    # ~48 MiB on 64 MiB parts (v7x), ~96 MiB on 128 MiB parts (v5e/v6e).
    return max(32 * 1024 * 1024, (cap * 3) // 4)


def _choose_tiles(m, k, n, x_itemsize, out_itemsize, vmem_limit_bytes):
    """Pick (tm, tn): row tile and output-column tile."""
    budget = max(8 * 1024 * 1024, vmem_limit_bytes - 8 * 1024 * 1024)

    # bf16 weight block (k, tn); count 2 buffers to stay safely under the
    # limit even if Mosaic double-buffers the constant-index weight.
    def w_bytes(tn):
        return 2 * k * tn * 2

    tn = n
    if w_bytes(tn) > budget // 2:
        # Tile over out_dim in 128-lane multiples so the weight block fits.
        tn = max(128, ((budget // 2) // (4 * k)) // 128 * 128)
        tn = min(tn, _round_up(n, 128))
        # TODO(synk): K-axis accumulation path for in_dim so large that even
        # a (k, 128) bf16 weight block exceeds the budget.

    rem = max(0, budget - w_bytes(tn))
    per_row = 2 * (k * x_itemsize + tn * out_itemsize)  # double-buffered x + out
    tm = min(2048, rem // per_row)
    tm = max(16, (tm // 16) * 16)
    # Keep >= ~8 grid steps over rows when m is large (DMA/compute overlap,
    # both v7x cores busy), but don't shrink row tiles below ~512 rows.
    if m > 8 * 512:
        tm = min(tm, max(512, _round_up(pl.cdiv(m, 8), 16)))
    tm = min(tm, _round_up(m, 16))
    return tm, tn


# --------------------------------------------------------------------------
# Wrapper
# --------------------------------------------------------------------------
def gcn_layer(x, weight, alpha=0.25, *, acti=True, out_dtype=jnp.float32):
    """Pallas forward of GCNLayer.

    x:      (..., in_dim) activations (f32 or bf16 accepted natively)
    weight: (in_dim, out_dim) -- torch Linear weight pre-transposed to (in, out)
    alpha:  PReLU slope (scalar or shape-(1,) array); ignored if acti=False
    returns (..., out_dim) in `out_dtype`
    """
    *lead, in_dim = x.shape
    out_dim = weight.shape[1]
    m = 1
    for d in lead:
        m *= d

    if x.dtype not in (jnp.float32, jnp.bfloat16):
        x = x.astype(jnp.float32)
    x2d = x.reshape(m, in_dim)
    w = weight.astype(jnp.bfloat16)

    vmem_limit = _vmem_limit_bytes()
    tm, tn = _choose_tiles(m, in_dim, out_dim,
                           jnp.dtype(x2d.dtype).itemsize,
                           jnp.dtype(out_dtype).itemsize,
                           vmem_limit)
    grid = (pl.cdiv(m, tm), pl.cdiv(out_dim, tn))

    x_spec = pl.BlockSpec((tm, in_dim), lambda i, j: (i, 0))   # streamed rows
    w_spec = pl.BlockSpec((in_dim, tn), lambda i, j: (0, j))   # resident weight
    o_spec = pl.BlockSpec((tm, tn), lambda i, j: (i, j))       # true-width output

    compiler_params = pltpu.CompilerParams(
        dimension_semantics=("parallel", "parallel"),
        vmem_limit_bytes=vmem_limit,
    )
    out_shape = jax.ShapeDtypeStruct((m, out_dim), out_dtype)

    if acti:
        a = jnp.reshape(jnp.asarray(alpha, jnp.float32), (1,))
        out2d = pl.pallas_call(
            _gcn_prelu_kernel,
            out_shape=out_shape,
            grid=grid,
            in_specs=[
                pl.BlockSpec(memory_space=pltpu.MemorySpace.SMEM),  # alpha scalar
                x_spec,
                w_spec,
            ],
            out_specs=o_spec,
            compiler_params=compiler_params,
        )(a, x2d, w)
    else:
        out2d = pl.pallas_call(
            _gcn_linear_kernel,
            out_shape=out_shape,
            grid=grid,
            in_specs=[x_spec, w_spec],
            out_specs=o_spec,
            compiler_params=compiler_params,
        )(x2d, w)

    return out2d.reshape(*lead, out_dim)


# --------------------------------------------------------------------------
# Self-test
# --------------------------------------------------------------------------
if __name__ == "__main__":
    in_dim, out_dim = 32, 16
    bs, num_nodes = 2, 8

    key = jax.random.PRNGKey(0)
    kx, kw = jax.random.split(key)
    x = jax.random.normal(kx, (bs, num_nodes, in_dim), jnp.float32)
    scale = 1.0 / jnp.sqrt(in_dim)
    weight = jax.random.uniform(kw, (in_dim, out_dim), jnp.float32, -scale, scale)
    alpha = 0.25  # nn.PReLU() default init

    out = gcn_layer(x, weight, alpha, acti=True)
    jax.block_until_ready(out)
    assert out.shape == (bs, num_nodes, out_dim)

    # references
    h_f32 = x @ weight
    ref_f32 = jnp.where(h_f32 > 0, h_f32, alpha * h_f32)
    # bf16-emulated reference (kernel casts operands to bf16, accumulates in f32)
    xb = x.astype(jnp.bfloat16).astype(jnp.float32)
    wb = weight.astype(jnp.bfloat16).astype(jnp.float32)
    h_bf = xb @ wb
    ref_bf = jnp.where(h_bf > 0, h_bf, alpha * h_bf)

    assert jnp.allclose(out, ref_bf, atol=1e-3, rtol=1e-3)
    assert jnp.allclose(out, ref_f32, atol=5e-2, rtol=5e-2)

    # acti=False path (pure linear, no PReLU)
    out_lin = gcn_layer(x, weight, acti=False)
    jax.block_until_ready(out_lin)
    assert jnp.allclose(out_lin, h_bf, atol=1e-3, rtol=1e-3)

    # ragged row count (non-multiple-of-8 node count) -> partial last block
    x_odd = jax.random.normal(kx, (3, 5, in_dim), jnp.float32)
    out_odd = gcn_layer(x_odd, weight, alpha)
    jax.block_until_ready(out_odd)
    h_odd = (x_odd.astype(jnp.bfloat16).astype(jnp.float32)) @ wb
    ref_odd = jnp.where(h_odd > 0, h_odd, alpha * h_odd)
    assert out_odd.shape == (3, 5, out_dim)
    assert jnp.allclose(out_odd, ref_odd, atol=1e-3, rtol=1e-3)

    # optional bf16-output path (halves output HBM writeback)
    out_bf16 = gcn_layer(x, weight, alpha, out_dtype=jnp.bfloat16)
    jax.block_until_ready(out_bf16)
    assert out_bf16.dtype == jnp.bfloat16
    assert jnp.allclose(out_bf16.astype(jnp.float32), ref_bf, atol=1e-2, rtol=1e-2)

    print("KERNEL_OK")
</pallas_src>

<mosaic_0001>
module attributes {stable_mosaic.version = 11 : i64} {
  func.func @_gcn_prelu_kernel(%arg0: i32, %arg1: i32, %arg2: memref<1xf32, #tpu.memory_space<smem>>, %arg3: memref<16x32xf32, #tpu.memory_space<vmem>>, %arg4: memref<32x16xbf16, #tpu.memory_space<vmem>>, %arg5: memref<16x16xf32, #tpu.memory_space<vmem>>) attributes {dimension_semantics = [#tpu.dimension_semantics<parallel>, #tpu.dimension_semantics<parallel>], iteration_bounds = array<i64: 1, 1>, scalar_prefetch = 0 : i64, scratch_operands = 0 : i64, tpu.core_type = #tpu.core_type<tc>, window_params = [{transform_indices = @transform_0, window_bounds = array<i64: 1>}, {transform_indices = @transform_1, window_bounds = array<i64: 16, 32>}, {transform_indices = @transform_2, window_bounds = array<i64: 32, 16>}, {transform_indices = @transform_3, window_bounds = array<i64: 16, 16>}]} {
    %c0 = arith.constant 0 : index
    %c0_0 = arith.constant 0 : index
    %0 = vector.load %arg3[%c0, %c0_0] : memref<16x32xf32, #tpu.memory_space<vmem>>, vector<16x32xf32>
    %1 = arith.truncf %0 : vector<16x32xf32> to vector<16x32xbf16>
    %c0_1 = arith.constant 0 : index
    %c0_2 = arith.constant 0 : index
    %2 = vector.load %arg4[%c0_1, %c0_2] : memref<32x16xbf16, #tpu.memory_space<vmem>>, vector<32x16xbf16>
    %cst = arith.constant dense<0.000000e+00> : vector<16x16xf32>
    %3 = tpu.matmul %1, %2, %cst {dimension_numbers = #tpu.dot_dimension_numbers<[1], [0], [0], [1], [0, 0, 1, 1], [], []>} : vector<16x32xbf16>, vector<32x16xbf16>, vector<16x16xf32> -> vector<16x16xf32>
    %c0_3 = arith.constant 0 : index
    %4 = memref.load %arg2[%c0_3] : memref<1xf32, #tpu.memory_space<smem>>
    %cst_4 = arith.constant 0.000000e+00 : f32
    %5 = vector.broadcast %cst_4 : f32 to vector<16x16xf32>
    %6 = arith.cmpf ogt, %3, %5 : vector<16x16xf32>
    %7 = vector.broadcast %4 : f32 to vector<16x16xf32>
    %8 = arith.mulf %7, %3 : vector<16x16xf32>
    %9 = arith.select %6, %3, %8 : vector<16x16xi1>, vector<16x16xf32>
    %c0_5 = arith.constant 0 : index
    %c0_6 = arith.constant 0 : index
    %10 = vector.load %arg5[%c0_5, %c0_6] : memref<16x16xf32, #tpu.memory_space<vmem>>, vector<16x16xf32>
    tpu.vector_store %arg5[%c0_5, %c0_6], %9 {strides = array<i32>} : memref<16x16xf32, #tpu.memory_space<vmem>>, vector<16x16xf32>,
    return
  }
  func.func @transform_0(%arg0: i32, %arg1: i32) -> i32 {
    %c0_i32 = arith.constant 0 : i32
    %c0_i32_0 = arith.constant 0 : i32
    return %c0_i32 : i32
  }
  func.func @transform_1(%arg0: i32, %arg1: i32) -> (i32, i32) {
    %c0_i32 = arith.constant 0 : i32
    %c0_i32_0 = arith.constant 0 : i32
    return %arg0, %c0_i32 : i32, i32
  }
  func.func @transform_2(%arg0: i32, %arg1: i32) -> (i32, i32) {
    %c0_i32 = arith.constant 0 : i32
    %c0_i32_0 = arith.constant 0 : i32
    return %c0_i32, %arg1 : i32, i32
  }
  func.func @transform_3(%arg0: i32, %arg1: i32) -> (i32, i32) {
    %c0_i32 = arith.constant 0 : i32
    return %arg0, %arg1 : i32, i32
  }
}

</mosaic_0001>

<bundles_post_ra>
// kernel: tpu_custom_call.1
= control target key start
LH: loop header
LB: loop body
LE: loop exit
PB: predicated region body
PF: predicated region fallthrough
CT: control target
= control target key end

     0   :  { %v153_v1 = vmov 0.0   ;;  %vm154_vm0 = vmmov 0   ;;  %s205_s0 = inlined_call_operand.<no memory space> [shape: f32[1], index: 0, kind: input, shape index: {}]   ;;  %s206_s1 = inlined_call_operand.vmem [shape: f32[16,32], index: 1, kind: input, shape index: {}]   ;;  %s207_s2 = inlined_call_operand.vmem [shape: bf16[32,16], index: 2, kind: input, shape index: {}]   ;;  %s208_s3 = inlined_call_operand.hbm [shape: f32[16,16], index: 3, kind: output, shape index: {}]  }
   0x1   :  { %v127_v0 = vld [vmem:[%s207_s2] sm:$0xff]   ;;  %114 = vmatprep.subr.bf16.mxu0 %v153_v1  ;;  %v128_v2 = vld [vmem:[%s207_s2 + $0x8] sm:$0xff]   ;;  %118 = vmatprep.mubr.msk.bf16.mxu0 %vm154_vm0, %v153_v1 }
   0x2   :  { %115 = vmatpush3.bf16.msra.mxu0 %v127_v0  ;;  %v17_v3 = vld [vmem:[%s206_s1] sm:$0xff]  ;;  %v18_v4 = vld [vmem:[%s206_s1 + $0x8] sm:$0xff] }
   0x3   :  { %9 = vsyncpa [#allocation4], 0  ;;  %116 = vmatprep.subr.bf16.mxu0 %v153_v1  ;;  %v19_v5 = vpack.c.bf16 %v18_v4, %v17_v3  ;;  %vm36_vm1 = vcmask 261120   ;;  %v84_v6 = vstv %s205_s0  ;;  %s155_s2 = smov [#allocation3]   ;;  %vm89_vm3 = vcmask 130048  }
   0x4   :  { %s97_s22 = sshll.u32 %s155_s2, 4  ;;  %s98_s22 = int_to_ptr.vmem [resolvable:$true] %s97_s22 }
   0x5   :  { %s129_s1 = scalar_lea.vmem %s98_s22, 256  ;;  %p134_p1 = scmp.lt.s32.totalorder %s98_s22, %s98_s22 }
   0x6   :  { %117 = vmatpush3.bf16.msra.mxu0 %v128_v2  ;;  %p130_p0 = scmp.ne.s32.totalorder %s98_s22, %s129_s1  ;;  %p135_p2 = scmp.lt.s32.totalorder %s129_s1, %s129_s1 }
   0x8   :  { %p136_p3 = por %p135_p2, %p134_p1 }
   0x9   :  { %119 = vmatmul.mubr.msk.bf16.vlgmr.msra.gmra.mrb[0].mxu0 %vm36_vm1, %v19_v5 }
   0xa   :  { %p137_p4 = pnand %p136_p3, %p130_p0 }
  0xdc   :  { %v74_v7 = vpop.f32.mrb[0].mxu0 }
  0xdd   :  { %vm82_vm2 = vcmp.gt.f32.partialorder %v74_v7, 0.0  ;;  %v85_v8 = vmul.f32 %v84_v6, %v74_v7  ;;  %v120_v9 = vpop.f32.mrb[1].mxu0 }
  0xde   :  { %v77_v10 = vpop.f32.mrb[2].mxu0 }
  0xdf   :  { %v87_v11 = vsel %vm82_vm2, %v74_v7, %v85_v8  ;;  %vm83_vm4 = vcmp.gt.f32.partialorder %v77_v10, 0.0  ;;  %v86_v12 = vmul.f32 %v84_v6, %v77_v10  ;;  %v121_v13 = vpop.f32.mrb[3].mxu0 }
  0xe0   :  { %90 = vst.msk [vmem:[#allocation3] sm:$0xff] %vm89_vm3, %v87_v11 }
  0xe1   :  { %v88_v14 = vsel %vm83_vm4, %v77_v10, %v86_v12 }
  0xe2   :  { %91 = vst.msk [vmem:[#allocation3 + $0x8] sm:$0xff] %vm89_vm3, %v88_v14 }
  0xe3   :  { %140 = shalt.err (!%p137_p4)
}
  0xe4   :  { %s141_s24 = scalar_lea.hbm %s208_s3, 256 }
  0xe5   :  { %p142_p5 = scmp.ne.s32.totalorder %s208_s3, %s141_s24  ;;  %p145_p6 = scmp.lt.u32.totalorder %s141_s24, %s208_s3 }
  0xe7   :  { %p147_p7 = pnand %p145_p6, %p142_p5 }
  0xe9   :  { %150 = shalt.err (!%p147_p7)
}
  0xea   :  { %s156_s29 = smov 128   ;;  %s157_s30 = smov 8  }
  0xeb   :  { %103 = dma.vmem_to_hbm [thread:$0]  %s98_s22, 256, %s208_s3, [#allocation4], %s156_s29, %s156_s29, %s157_s30  }
  0xec   :  { %151 = dma.done.wait [#allocation4], 256  }
  0xed   :  { %152 = vsyncadd [#allocation4], 4294967040 }
  0xee   :  { %107 = vsyncpa [#allocation4], 1 }

</bundles_post_ra>
